<compile_context>
chip_gen: v7x
topology: tpu7x:2x2x1
jax: 0.10.0
libtpu: 0.0.40
codegen_flags: <defaults>
</compile_context>

<pallas_src>
import functools

import jax
import jax.numpy as jnp
from jax import lax
from jax.experimental import pallas as pl
from jax.experimental.pallas import tpu as pltpu


def gam_kernel(x_ref, wgt_ref, bnsc_ref, bnsh_ref, w1t_ref, w2t_ref,
               wsr_ref, wsc_ref, bs_ref, o_ref, ca_sc, gs_sc, *, bt, inv_hw):
    f32 = jnp.float32
    hp = lax.Precision.HIGHEST   # matmuls are tiny vs. HBM traffic; keep exact

    # ---------------- Phase 1: pooled math, batched over the whole block ---
    # Global average pool for every batch at once (f32 accumulation).
    means = jnp.sum(x_ref[...].astype(f32), axis=-1) * inv_hw        # (bt, C)

    wg_t = wgt_ref[...]          # (C, C)   conv_global weight, transposed
    bn_sc = bnsc_ref[...]        # (1, C)   folded BN scale
    bn_sh = bnsh_ref[...]        # (1, C)   folded BN shift
    w1_t = w1t_ref[...]          # (C, Cr)  channel-gate reduce conv^T
    w2_t = w2t_ref[...]          # (Cr, C)  channel-gate expand conv^T
    ws_col = wsc_ref[...]        # (C, 1)   spatial-gate weight (column)
    bias_s = bs_ref[...]         # (1, 1)   spatial-gate bias

    # Global branch: 1x1 conv + folded BN + ReLU (one MXU matmul, N = C).
    g_rows = jnp.dot(means, wg_t, precision=hp,
                     preferred_element_type=f32)                      # (bt, C)
    g_rows = jnp.maximum(g_rows * bn_sc + bn_sh, 0.0)

    # Channel gate: conv1x1 -> ReLU -> conv1x1 -> sigmoid.
    h = jnp.maximum(jnp.dot(means, w1_t, precision=hp,
                            preferred_element_type=f32), 0.0)         # (bt, Cr)
    ca_rows = jnp.dot(h, w2_t, precision=hp,
                      preferred_element_type=f32)                     # (bt, C)
    ca_rows = 1.0 / (1.0 + jnp.exp(-ca_rows))

    # Spatial gate, global part folded algebraically to a per-batch scalar:
    #   ws . (x_ch + g) + b  ==  (ws @ x_ch) + (ws . g + b)
    gs = jnp.dot(g_rows, ws_col, precision=hp,
                 preferred_element_type=f32) + bias_s                 # (bt, 1)

    # Stash per-batch vectors in column layout for the streaming loop.
    ca_sc[...] = ca_rows[:, :, None]                                  # (bt, C, 1)
    gs_sc[...] = gs[:, :, None]                                       # (bt, 1, 1)

    ws_row = wsr_ref[...]        # (1, C)   spatial-gate weight (row)

    # ---------------- Phase 2: stream the block, one batch per iteration ---
    @pl.loop(0, bt)
    def _(i):
        x = x_ref[i].astype(f32)                                      # (C, HW)
        x_ch = x * ca_sc[i]                                           # (C, HW)
        # Cross-channel reduction on the MXU (never materialize x + global).
        s_x = jnp.dot(ws_row, x_ch, precision=hp,
                      preferred_element_type=f32)                     # (1, HW)
        sa = 1.0 / (1.0 + jnp.exp(-(s_x + gs_sc[i])))                 # (1, HW)
        o_ref[i] = (x_ch * sa).astype(o_ref.dtype)


def _vmem_capacity_bytes():
    try:
        return int(pltpu.get_tpu_info().vmem_capacity_bytes)
    except Exception:
        return 64 * 1024 * 1024          # conservative (v7x per-core VMEM)


def _choose_block_config(batch, channels, hw, itemsize):
    """Pick the per-step batch-block size `bt` and a matching VMEM limit."""
    capacity = _vmem_capacity_bytes()
    budget = (capacity * 5) // 8         # headroom for compiler scratch/spills

    weight_bytes = 4 * (channels * channels + 6 * channels + 8)

    def vmem_needed(bt):
        block = bt * channels * hw
        io = 4 * block * itemsize        # double-buffered input + output blocks
        temps = 2 * block * 4            # in-kernel f32 temporaries (x / x_ch)
        scratch = 4 * bt * (channels + 2) * 4
        return io + temps + scratch + weight_bytes + (1 << 20)

    # >= 4 grid steps when possible: >= 2 steps per TensorCore on dual-TC
    # chips so the i+1 prefetch exists and DMAs stay hidden behind compute.
    min_steps = min(batch, 4)
    bt = 1
    for cand in range(1, batch + 1):
        if batch % cand:
            continue
        if batch // cand < min_steps:
            break
        if vmem_needed(cand) <= budget:
            bt = cand

    vmem_limit = max(vmem_needed(bt) + (8 << 20), 32 << 20)
    vmem_limit = min(vmem_limit, (capacity * 9) // 10)
    return bt, int(vmem_limit)


@jax.jit
def gam_forward(x, wg, bn_scale, bn_shift, w1, w2, ws, bs):
    """x: (B, C, H, W) NCHW.  Weights follow PyTorch 1x1-conv conventions:
       wg (C, C), w1 (C//r, C), w2 (C, C//r), ws (C,), bs scalar."""
    B, C, H, W = x.shape
    HW = H * W
    Cr = w1.shape[0]

    # No HBM-side padding of the activation tensor: full-dim blocks are legal
    # even when C % 8 != 0 or HW % 128 != 0, so we stream x as-is.
    x_flat = x.reshape(B, C, HW)

    f32 = jnp.float32
    wg_t = wg.astype(f32).T                     # (C, C)
    w1_t = w1.astype(f32).T                     # (C, Cr)
    w2_t = w2.astype(f32).T                     # (Cr, C)
    bn_sc = bn_scale.astype(f32).reshape(1, C)
    bn_sh = bn_shift.astype(f32).reshape(1, C)
    ws_row = ws.astype(f32).reshape(1, C)
    ws_col = ws.astype(f32).reshape(C, 1)
    bs_arr = jnp.reshape(bs, (1, 1)).astype(f32)

    itemsize = x.dtype.itemsize
    bt, vmem_limit = _choose_block_config(B, C, HW, itemsize)

    kernel = functools.partial(gam_kernel, bt=bt, inv_hw=1.0 / HW)

    cost = pl.CostEstimate(
        flops=int(6 * B * C * HW + 2 * B * C * (C + 2 * Cr + 1)),
        transcendentals=int(B * (HW + 2 * C)),
        bytes_accessed=int(2 * B * C * HW * itemsize + 4 * C * (C + 2 * Cr + 4)),
    )

    out_flat = pl.pallas_call(
        kernel,
        out_shape=jax.ShapeDtypeStruct((B, C, HW), x.dtype),
        grid_spec=pltpu.PrefetchScalarGridSpec(
            num_scalar_prefetch=0,
            grid=(B // bt,),
            in_specs=[
                pl.BlockSpec((bt, C, HW), lambda b: (b, 0, 0)),   # x (streamed)
                pl.BlockSpec((C, C), lambda b: (0, 0)),           # conv_global W^T
                pl.BlockSpec((1, C), lambda b: (0, 0)),           # BN scale
                pl.BlockSpec((1, C), lambda b: (0, 0)),           # BN shift
                pl.BlockSpec((C, Cr), lambda b: (0, 0)),          # gate conv1 W^T
                pl.BlockSpec((Cr, C), lambda b: (0, 0)),          # gate conv2 W^T
                pl.BlockSpec((1, C), lambda b: (0, 0)),           # spatial W (row)
                pl.BlockSpec((C, 1), lambda b: (0, 0)),           # spatial W (col)
                pl.BlockSpec((1, 1), lambda b: (0, 0)),           # spatial bias
            ],
            out_specs=pl.BlockSpec((bt, C, HW), lambda b: (b, 0, 0)),
            scratch_shapes=[
                pltpu.VMEM((bt, C, 1), jnp.float32),              # channel att (col)
                pltpu.VMEM((bt, 1, 1), jnp.float32),              # folded global+bias
            ],
        ),
        compiler_params=pltpu.CompilerParams(
            dimension_semantics=("parallel",),
            vmem_limit_bytes=vmem_limit),
        cost_estimate=cost,
    )(x_flat, wg_t, bn_sc, bn_sh, w1_t, w2_t, ws_row, ws_col, bs_arr)

    return out_flat.reshape(B, C, H, W)


def gam_reference(x, wg, bn_scale, bn_shift, w1, w2, ws, bs):
    """Pure-JAX reference mirroring the PyTorch forward (eval-mode BN)."""
    hp = jax.lax.Precision.HIGHEST
    mean = jnp.mean(x, axis=(2, 3), keepdims=True)                    # (B,C,1,1)
    g = jnp.einsum('oc,bcij->boij', wg, mean, precision=hp)
    g = g * bn_scale[None, :, None, None] + bn_shift[None, :, None, None]
    g = jnp.maximum(g, 0.0)
    h = jnp.maximum(jnp.einsum('rc,bcij->brij', w1, mean, precision=hp), 0.0)
    ca = jax.nn.sigmoid(jnp.einsum('cr,brij->bcij', w2, h, precision=hp))
    x_ch = x * ca
    x_g = x_ch + g
    s = jax.nn.sigmoid(
        jnp.einsum('c,bcij->bij', ws, x_g, precision=hp)[:, None, :, :] + bs)
    return x_ch * s


if __name__ == "__main__":
    B, C, H, W = 8, 32, 16, 16
    reduction_ratio = 16
    Cr = C // reduction_ratio

    key = jax.random.PRNGKey(0)
    ks = jax.random.split(key, 10)

    x = jax.random.normal(ks[0], (B, C, H, W), jnp.float32)

    # conv weights (PyTorch conventions: (C_out, C_in) for 1x1 convs)
    wg = 0.1 * jax.random.normal(ks[1], (C, C), jnp.float32)       # conv_global
    w1 = 0.1 * jax.random.normal(ks[2], (Cr, C), jnp.float32)      # gate conv1
    w2 = 0.1 * jax.random.normal(ks[3], (C, Cr), jnp.float32)      # gate conv2
    ws = 0.1 * jax.random.normal(ks[4], (C,), jnp.float32)         # spatial weight
    bs = 0.1 * jax.random.normal(ks[5], (), jnp.float32)           # spatial bias

    # BatchNorm2d (eval-mode), folded into an affine scale/shift
    gamma = 1.0 + 0.1 * jax.random.normal(ks[6], (C,), jnp.float32)
    beta = 0.1 * jax.random.normal(ks[7], (C,), jnp.float32)
    run_mean = 0.1 * jax.random.normal(ks[8], (C,), jnp.float32)
    run_var = 0.9 + 0.2 * jax.random.uniform(ks[9], (C,), jnp.float32)
    eps = 1e-5
    bn_scale = gamma / jnp.sqrt(run_var + eps)
    bn_shift = beta - run_mean * bn_scale

    out = gam_forward(x, wg, bn_scale, bn_shift, w1, w2, ws, bs)
    out = jax.block_until_ready(out)

    ref = gam_reference(x, wg, bn_scale, bn_shift, w1, w2, ws, bs)
    assert out.shape == ref.shape == (B, C, H, W)
    max_err = float(jnp.max(jnp.abs(out - ref)))
    assert jnp.allclose(out, ref, atol=2e-3, rtol=2e-3), f"max_err={max_err}"

    print("KERNEL_OK")
</pallas_src>

<mosaic_0001>
module attributes {stable_mosaic.version = 11 : i64} {
  func.func @gam_kernel(%arg0: i32, %arg1: memref<2x32x256xf32, #tpu.memory_space<vmem>>, %arg2: memref<32x32xf32, #tpu.memory_space<vmem>>, %arg3: memref<1x32xf32, #tpu.memory_space<vmem>>, %arg4: memref<1x32xf32, #tpu.memory_space<vmem>>, %arg5: memref<32x2xf32, #tpu.memory_space<vmem>>, %arg6: memref<2x32xf32, #tpu.memory_space<vmem>>, %arg7: memref<1x32xf32, #tpu.memory_space<vmem>>, %arg8: memref<32x1xf32, #tpu.memory_space<vmem>>, %arg9: memref<1x1xf32, #tpu.memory_space<vmem>>, %arg10: memref<2x32x256xf32, #tpu.memory_space<vmem>>, %arg11: memref<2x32x1xf32, #tpu.memory_space<vmem>>, %arg12: memref<2x1x1xf32, #tpu.memory_space<vmem>>) attributes {dimension_semantics = [#tpu.dimension_semantics<parallel>], iteration_bounds = array<i64: 4>, scalar_prefetch = 0 : i64, scratch_operands = 2 : i64, tpu.core_type = #tpu.core_type<tc>, window_params = [{transform_indices = @transform_0, window_bounds = array<i64: 2, 32, 256>}, {pipeline_mode = #tpu.pipeline_mode<synchronous>, transform_indices = @transform_1, window_bounds = array<i64: 32, 32>}, {pipeline_mode = #tpu.pipeline_mode<synchronous>, transform_indices = @transform_2, window_bounds = array<i64: 1, 32>}, {pipeline_mode = #tpu.pipeline_mode<synchronous>, transform_indices = @transform_3, window_bounds = array<i64: 1, 32>}, {pipeline_mode = #tpu.pipeline_mode<synchronous>, transform_indices = @transform_4, window_bounds = array<i64: 32, 2>}, {pipeline_mode = #tpu.pipeline_mode<synchronous>, transform_indices = @transform_5, window_bounds = array<i64: 2, 32>}, {pipeline_mode = #tpu.pipeline_mode<synchronous>, transform_indices = @transform_6, window_bounds = array<i64: 1, 32>}, {pipeline_mode = #tpu.pipeline_mode<synchronous>, transform_indices = @transform_7, window_bounds = array<i64: 32, 1>}, {pipeline_mode = #tpu.pipeline_mode<synchronous>, transform_indices = @transform_8, window_bounds = array<i64: 1, 1>}, {transform_indices = @transform_9, window_bounds = array<i64: 2, 32, 256>}]} {
    %c0 = arith.constant 0 : index
    %c0_0 = arith.constant 0 : index
    %c0_1 = arith.constant 0 : index
    %0 = vector.load %arg1[%c0, %c0_0, %c0_1] : memref<2x32x256xf32, #tpu.memory_space<vmem>>, vector<2x32x256xf32>
    %cst = arith.constant dense<0.000000e+00> : vector<2x32xf32>
    %1 = vector.multi_reduction <add>, %0, %cst [2] : vector<2x32x256xf32> to vector<2x32xf32>
    %cst_2 = arith.constant 3.906250e-03 : f32
    %2 = vector.broadcast %cst_2 : f32 to vector<2x32xf32>
    %3 = arith.mulf %1, %2 : vector<2x32xf32>
    %c0_3 = arith.constant 0 : index
    %c0_4 = arith.constant 0 : index
    %4 = vector.load %arg2[%c0_3, %c0_4] : memref<32x32xf32, #tpu.memory_space<vmem>>, vector<32x32xf32>
    %c0_5 = arith.constant 0 : index
    %c0_6 = arith.constant 0 : index
    %5 = vector.load %arg3[%c0_5, %c0_6] : memref<1x32xf32, #tpu.memory_space<vmem>>, vector<1x32xf32>
    %c0_7 = arith.constant 0 : index
    %c0_8 = arith.constant 0 : index
    %6 = vector.load %arg4[%c0_7, %c0_8] : memref<1x32xf32, #tpu.memory_space<vmem>>, vector<1x32xf32>
    %c0_9 = arith.constant 0 : index
    %c0_10 = arith.constant 0 : index
    %7 = vector.load %arg5[%c0_9, %c0_10] : memref<32x2xf32, #tpu.memory_space<vmem>>, vector<32x2xf32>
    %c0_11 = arith.constant 0 : index
    %c0_12 = arith.constant 0 : index
    %8 = vector.load %arg6[%c0_11, %c0_12] : memref<2x32xf32, #tpu.memory_space<vmem>>, vector<2x32xf32>
    %c0_13 = arith.constant 0 : index
    %c0_14 = arith.constant 0 : index
    %9 = vector.load %arg8[%c0_13, %c0_14] : memref<32x1xf32, #tpu.memory_space<vmem>>, vector<32x1xf32>
    %c0_15 = arith.constant 0 : index
    %c0_16 = arith.constant 0 : index
    %10 = vector.load %arg9[%c0_15, %c0_16] : memref<1x1xf32, #tpu.memory_space<vmem>>, vector<1x1xf32>
    %cst_17 = arith.constant dense<0.000000e+00> : vector<2x32xf32>
    %11 = tpu.matmul %3, %4, %cst_17 {dimension_numbers = #tpu.dot_dimension_numbers<[1], [0], [0], [1], [0, 0, 1, 1], [], []>, precision = #tpu.contract_precision<fp32>} : vector<2x32xf32>, vector<32x32xf32>, vector<2x32xf32> -> vector<2x32xf32>
    %12 = vector.broadcast %5 : vector<1x32xf32> to vector<2x32xf32>
    %13 = arith.mulf %11, %12 : vector<2x32xf32>
    %14 = vector.broadcast %6 : vector<1x32xf32> to vector<2x32xf32>
    %15 = arith.addf %13, %14 : vector<2x32xf32>
    %cst_18 = arith.constant 0.000000e+00 : f32
    %16 = vector.broadcast %cst_18 : f32 to vector<2x32xf32>
    %17 = arith.maximumf %15, %16 : vector<2x32xf32>
    %cst_19 = arith.constant dense<0.000000e+00> : vector<2x2xf32>
    %18 = tpu.matmul %3, %7, %cst_19 {dimension_numbers = #tpu.dot_dimension_numbers<[1], [0], [0], [1], [0, 0, 1, 1], [], []>, precision = #tpu.contract_precision<fp32>} : vector<2x32xf32>, vector<32x2xf32>, vector<2x2xf32> -> vector<2x2xf32>
    %cst_20 = arith.constant 0.000000e+00 : f32
    %19 = vector.broadcast %cst_20 : f32 to vector<2x2xf32>
    %20 = arith.maximumf %18, %19 : vector<2x2xf32>
    %cst_21 = arith.constant dense<0.000000e+00> : vector<2x32xf32>
    %21 = tpu.matmul %20, %8, %cst_21 {dimension_numbers = #tpu.dot_dimension_numbers<[1], [0], [0], [1], [0, 0, 1, 1], [], []>, precision = #tpu.contract_precision<fp32>} : vector<2x2xf32>, vector<2x32xf32>, vector<2x32xf32> -> vector<2x32xf32>
    %cst_22 = arith.constant 0.000000e+00 : f32
    %22 = vector.broadcast %cst_22 : f32 to vector<2x32xf32>
    %23 = arith.subf %22, %21 : vector<2x32xf32>
    %24 = math.exp %23 : vector<2x32xf32>
    %cst_23 = arith.constant 1.000000e+00 : f32
    %25 = vector.broadcast %cst_23 : f32 to vector<2x32xf32>
    %26 = arith.addf %25, %24 : vector<2x32xf32>
    %cst_24 = arith.constant 1.000000e+00 : f32
    %27 = vector.broadcast %cst_24 : f32 to vector<2x32xf32>
    %28 = arith.divf %27, %26 : vector<2x32xf32>
    %cst_25 = arith.constant dense<0.000000e+00> : vector<2x1xf32>
    %29 = tpu.matmul %17, %9, %cst_25 {dimension_numbers = #tpu.dot_dimension_numbers<[1], [0], [0], [1], [0, 0, 1, 1], [], []>, precision = #tpu.contract_precision<fp32>} : vector<2x32xf32>, vector<32x1xf32>, vector<2x1xf32> -> vector<2x1xf32>
    %30 = vector.broadcast %10 : vector<1x1xf32> to vector<2x1xf32>
    %31 = arith.addf %29, %30 : vector<2x1xf32>
    %32 = vector.shape_cast %28 : vector<2x32xf32> to vector<2x32x1xf32>
    %c0_26 = arith.constant 0 : index
    %c0_27 = arith.constant 0 : index
    %c0_28 = arith.constant 0 : index
    %33 = vector.load %arg11[%c0_26, %c0_27, %c0_28] : memref<2x32x1xf32, #tpu.memory_space<vmem>>, vector<2x32x1xf32>
    tpu.vector_store %arg11[%c0_26, %c0_27, %c0_28], %32 {strides = array<i32>} : memref<2x32x1xf32, #tpu.memory_space<vmem>>, vector<2x32x1xf32>,
    %34 = vector.shape_cast %31 : vector<2x1xf32> to vector<2x1x1xf32>
    %c0_29 = arith.constant 0 : index
    %c0_30 = arith.constant 0 : index
    %c0_31 = arith.constant 0 : index
    %35 = vector.load %arg12[%c0_29, %c0_30, %c0_31] : memref<2x1x1xf32, #tpu.memory_space<vmem>>, vector<2x1x1xf32>
    tpu.vector_store %arg12[%c0_29, %c0_30, %c0_31], %34 {strides = array<i32>} : memref<2x1x1xf32, #tpu.memory_space<vmem>>, vector<2x1x1xf32>,
    %c0_32 = arith.constant 0 : index
    %c0_33 = arith.constant 0 : index
    %36 = vector.load %arg7[%c0_32, %c0_33] : memref<1x32xf32, #tpu.memory_space<vmem>>, vector<1x32xf32>
    %c0_i32 = arith.constant 0 : i32
    %c2_i32 = arith.constant 2 : i32
    %37 = arith.addi %c0_i32, %c2_i32 : i32
    %c1_i32 = arith.constant 1 : i32
    scf.for %arg13 = %c0_i32 to %37 step %c1_i32  : i32 {
      %c1_i32_35 = arith.constant 1 : i32
      %38 = arith.muli %arg13, %c1_i32_35 : i32
      %c0_i32_36 = arith.constant 0 : i32
      %39 = arith.addi %c0_i32_36, %38 : i32
      %40 = arith.index_cast %39 : i32 to index
      %c0_37 = arith.constant 0 : index
      %c0_38 = arith.constant 0 : index
      %41 = vector.load %arg1[%40, %c0_37, %c0_38] : memref<2x32x256xf32, #tpu.memory_space<vmem>>, vector<1x32x256xf32>
      %42 = vector.shape_cast %41 : vector<1x32x256xf32> to vector<32x256xf32>
      %43 = arith.index_cast %39 : i32 to index
      %c0_39 = arith.constant 0 : index
      %c0_40 = arith.constant 0 : index
      %44 = vector.load %arg11[%43, %c0_39, %c0_40] : memref<2x32x1xf32, #tpu.memory_space<vmem>>, vector<1x32x1xf32>
      %45 = vector.shape_cast %44 : vector<1x32x1xf32> to vector<32x1xf32>
      %46 = vector.broadcast %45 : vector<32x1xf32> to vector<32x256xf32>
      %47 = arith.mulf %42, %46 : vector<32x256xf32>
      %cst_41 = arith.constant dense<0.000000e+00> : vector<1x256xf32>
      %48 = tpu.matmul %36, %47, %cst_41 {dimension_numbers = #tpu.dot_dimension_numbers<[1], [0], [0], [1], [0, 0, 1, 1], [], []>, precision = #tpu.contract_precision<fp32>} : vector<1x32xf32>, vector<32x256xf32>, vector<1x256xf32> -> vector<1x256xf32>
      %49 = arith.index_cast %39 : i32 to index
      %c0_42 = arith.constant 0 : index
      %c0_43 = arith.constant 0 : index
      %50 = vector.load %arg12[%49, %c0_42, %c0_43] : memref<2x1x1xf32, #tpu.memory_space<vmem>>, vector<1x1x1xf32>
      %51 = vector.shape_cast %50 : vector<1x1x1xf32> to vector<1x1xf32>
      %52 = vector.broadcast %51 : vector<1x1xf32> to vector<1x256xf32>
      %53 = arith.addf %48, %52 : vector<1x256xf32>
      %cst_44 = arith.constant 0.000000e+00 : f32
      %54 = vector.broadcast %cst_44 : f32 to vector<1x256xf32>
      %55 = arith.subf %54, %53 : vector<1x256xf32>
      %56 = math.exp %55 : vector<1x256xf32>
      %cst_45 = arith.constant 1.000000e+00 : f32
      %57 = vector.broadcast %cst_45 : f32 to vector<1x256xf32>
      %58 = arith.addf %57, %56 : vector<1x256xf32>
      %cst_46 = arith.constant 1.000000e+00 : f32
      %59 = vector.broadcast %cst_46 : f32 to vector<1x256xf32>
      %60 = arith.divf %59, %58 : vector<1x256xf32>
      %61 = vector.broadcast %60 : vector<1x256xf32> to vector<32x256xf32>
      %62 = arith.mulf %47, %61 : vector<32x256xf32>
      %63 = arith.index_cast %39 : i32 to index
      %c0_47 = arith.constant 0 : index
      %c0_48 = arith.constant 0 : index
      %64 = vector.load %arg10[%63, %c0_47, %c0_48] : memref<2x32x256xf32, #tpu.memory_space<vmem>>, vector<1x32x256xf32>
      %65 = vector.shape_cast %64 : vector<1x32x256xf32> to vector<32x256xf32>
      %66 = vector.shape_cast %62 : vector<32x256xf32> to vector<1x32x256xf32>
      tpu.vector_store %arg10[%63, %c0_47, %c0_48], %66 {strides = array<i32>} : memref<2x32x256xf32, #tpu.memory_space<vmem>>, vector<1x32x256xf32>,
    }
    %c2_i32_34 = arith.constant 2 : i32
    return
  }
  func.func @transform_0(%arg0: i32) -> (i32, i32, i32) {
    %c0_i32 = arith.constant 0 : i32
    %c0_i32_0 = arith.constant 0 : i32
    %c0_i32_1 = arith.constant 0 : i32
    return %arg0, %c0_i32, %c0_i32_0 : i32, i32, i32
  }
  func.func @transform_1(%arg0: i32) -> (i32, i32) {
    %c0_i32 = arith.constant 0 : i32
    %c0_i32_0 = arith.constant 0 : i32
    %c0_i32_1 = arith.constant 0 : i32
    return %c0_i32, %c0_i32_0 : i32, i32
  }
  func.func @transform_2(%arg0: i32) -> (i32, i32) {
    %c0_i32 = arith.constant 0 : i32
    %c0_i32_0 = arith.constant 0 : i32
    %c0_i32_1 = arith.constant 0 : i32
    return %c0_i32, %c0_i32_0 : i32, i32
  }
  func.func @transform_3(%arg0: i32) -> (i32, i32) {
    %c0_i32 = arith.constant 0 : i32
    %c0_i32_0 = arith.constant 0 : i32
    %c0_i32_1 = arith.constant 0 : i32
    return %c0_i32, %c0_i32_0 : i32, i32
  }
  func.func @transform_4(%arg0: i32) -> (i32, i32) {
    %c0_i32 = arith.constant 0 : i32
    %c0_i32_0 = arith.constant 0 : i32
    %c0_i32_1 = arith.constant 0 : i32
    return %c0_i32, %c0_i32_0 : i32, i32
  }
  func.func @transform_5(%arg0: i32) -> (i32, i32) {
    %c0_i32 = arith.constant 0 : i32
    %c0_i32_0 = arith.constant 0 : i32
    %c0_i32_1 = arith.constant 0 : i32
    return %c0_i32, %c0_i32_0 : i32, i32
  }
  func.func @transform_6(%arg0: i32) -> (i32, i32) {
    %c0_i32 = arith.constant 0 : i32
    %c0_i32_0 = arith.constant 0 : i32
    %c0_i32_1 = arith.constant 0 : i32
    return %c0_i32, %c0_i32_0 : i32, i32
  }
  func.func @transform_7(%arg0: i32) -> (i32, i32) {
    %c0_i32 = arith.constant 0 : i32
    %c0_i32_0 = arith.constant 0 : i32
    %c0_i32_1 = arith.constant 0 : i32
    return %c0_i32, %c0_i32_0 : i32, i32
  }
  func.func @transform_8(%arg0: i32) -> (i32, i32) {
    %c0_i32 = arith.constant 0 : i32
    %c0_i32_0 = arith.constant 0 : i32
    %c0_i32_1 = arith.constant 0 : i32
    return %c0_i32, %c0_i32_0 : i32, i32
  }
  func.func @transform_9(%arg0: i32) -> (i32, i32, i32) {
    %c0_i32 = arith.constant 0 : i32
    %c0_i32_0 = arith.constant 0 : i32
    %c0_i32_1 = arith.constant 0 : i32
    return %arg0, %c0_i32, %c0_i32_0 : i32, i32, i32
  }
}

</mosaic_0001>

<bundles_post_ra>
// kernel: gam_forward.1
= control target key start
LH: loop header
LB: loop body
LE: loop exit
PB: predicated region body
PF: predicated region fallthrough
CT: control target
= control target key end

     0   :  { %s3871_s11 = smov 0   ;;  %s4351_s0 = inlined_call_operand.vmem [shape: f32[8,32,256], index: 0, kind: input, shape index: {}]   ;;  %s4352_s1 = inlined_call_operand.vmem [shape: f32[32,32], index: 1, kind: input, shape index: {}]   ;;  %s4353_s2 = inlined_call_operand.vmem [shape: f32[1,32], index: 2, kind: input, shape index: {}]   ;;  %s4354_s3 = inlined_call_operand.vmem [shape: f32[1,32], index: 3, kind: input, shape index: {}]   ;;  %s4355_s4 = inlined_call_operand.vmem [shape: f32[32,2], index: 4, kind: input, shape index: {}]   ;;  %s4356_s5 = inlined_call_operand.vmem [shape: f32[2,32], index: 5, kind: input, shape index: {}]   ;;  %s4357_s6 = inlined_call_operand.vmem [shape: f32[1,32], index: 6, kind: input, shape index: {}]   ;;  %s4358_s7 = inlined_call_operand.vmem [shape: f32[32,1], index: 7, kind: input, shape index: {}]   ;;  %s4359_s8 = inlined_call_operand.<no memory space> [shape: f32[1,1], index: 8, kind: input, shape index: {}]   ;;  %s4360_s9 = inlined_call_operand.vmem [shape: f32[8,32,256], index: 9, kind: output, shape index: {}]  }
   0x1   :  { %v14_v0 = vstv %s4359_s8 }
   0x2   :  { %15 = vst [vmem:[#allocation4] sm:$0x1] %v14_v0 }
   0x3 LB: > { %s3198_s12 = sadd.s32 4294967295, %s3806_s11   ;;  %p3202_p0 = scmp.ge.s32.totalorder %s3806_s11, 1  ;;  %s3806_s11 = sphi %s3871_s11, %s21_s11  }
   0x4   : > { %p291_p1 = scmp.lt.s32.totalorder %s3806_s11, 5 }
   0x6   : > { %p292_p2 = pnand %p3202_p0, %p291_p1 }
   0x7   : > { %s3203_s13 = sshll.u32 (!%p292_p2), %s3198_s12, 1  ;;  %v3908_v25 = vld [vmem:[%s4355_s4] sm:$0xff] (!%p292_p2)  ;;  %v3913_v26 = vld [vmem:[%s4355_s4 + $0x8] sm:$0xff] (!%p292_p2)  ;;  %v3930_v31 = vld [vmem:[%s4355_s4 + $0x10] sm:$0xff] (!%p292_p2)  ;;  %v3812_v46 = vmov (!%p292_p2), 0.0|0.0   ;;  %vm3813_vm0 = vmmov (!%p292_p2), 0  }
   0x8   : > { %295 = sbr.rel (%p292_p2) target bundleno = 1304 (0x518), region = 56  ;;  %p330_p3 = scmp.lt.s32.totalorder (!%p292_p2), %s3203_s13, 7  ;;  %v967_v27 = vand.u32 (!%p292_p2), 4294901760, %v3908_v25  ;;  %v970_v28 = vand.u32 (!%p292_p2), 4294901760, %v3913_v26  ;;  %v3935_v32 = vld [vmem:[%s4355_s4 + $0x18] sm:$0xff] (!%p292_p2)  ;;  %v973_v35 = vand.u32 (!%p292_p2), 4294901760, %v3930_v31  ;;  %3594 = vmatprep.subr.bf16.mxu1 (!%p292_p2), %v3812_v46  ;;  %3552 = vmatprep.subr.bf16.mxu0 (!%p292_p2), %v3812_v46 }
   0x9   : > { %v976_v36 = vand.u32 (!%p292_p2), 4294901760, %v3935_v32  ;;  %v391_v51 = vld [vmem:[%s4352_s1] sm:$0xff] (!%p292_p2)  ;;  %v392_v52 = vld [vmem:[%s4352_s1 + $0x8] sm:$0xff] (!%p292_p2)  ;;  %v3814_v58 = vmov (!%p292_p2), 0.0   ;;  %v393_v61 = vld [vmem:[%s4352_s1 + $0x10] sm:$0xff] (!%p292_p2)  ;;  %vm426_vm1 = vcmask (!%p292_p2), 130112  }
   0xa   : > { %v3920_v29 = vsub.f32 (!%p292_p2), %v3908_v25, %v967_v27  ;;  %v3925_v30 = vsub.f32 (!%p292_p2), %v3913_v26, %v970_v28  ;;  %v3948_v39 = vsub.f32 (!%p292_p2), %v3930_v31, %v973_v35  ;;  %v467_v54 = vand.u32 (!%p292_p2), 4294901760, %v391_v51  ;;  %3409 = vmatprep.mubr.msk.f32.mxu1 (!%p292_p2), %vm3813_vm0, %v3814_v58  ;;  %v394_v62 = vld [vmem:[%s4352_s1 + $0x18] sm:$0xff] (!%p292_p2)  ;;  %3332 = vmatprep.mubr.msk.f32.mxu0 (!%p292_p2), %vm3813_vm0, %v3814_v58 }
   0xb   : > { %v3951_v40 = vsub.f32 (!%p292_p2), %v3935_v32, %v976_v36  ;;  %v470_v55 = vand.u32 (!%p292_p2), 4294901760, %v392_v52  ;;  %v473_v63 = vand.u32 (!%p292_p2), 4294901760, %v393_v61  ;;  %v476_v0 = vand.u32 (!%p292_p2), 4294901760, %v394_v62 }
   0xc   : > { %v1048_v33 = vand.u32 (!%p292_p2), 4294901760, %v3920_v29  ;;  %v1055_v34 = vand.u32 (!%p292_p2), 4294901760, %v3925_v30  ;;  %v1062_v43 = vand.u32 (!%p292_p2), 4294901760, %v3948_v39  ;;  %v3968_v57 = vsub.f32 (!%p292_p2), %v391_v51, %v467_v54 }
   0xd   : > { %v1069_v44 = vand.u32 (!%p292_p2), 4294901760, %v3951_v40  ;;  %v3966_v56 = vpack.c.bf16 (!%p292_p2), %v470_v55, %v467_v54  ;;  %v3972_v59 = vsub.f32 (!%p292_p2), %v392_v52, %v470_v55  ;;  %v3601_v60 = vpack.c.bf16 (!%p292_p2), %v3925_v30, %v3920_v29 }
   0xe   : > { %v1049_v37 = vsub.f32 (!%p292_p2), %v3920_v29, %v1048_v33  ;;  %v1056_v38 = vsub.f32 (!%p292_p2), %v3925_v30, %v1055_v34  ;;  %v1063_v47 = vsub.f32 (!%p292_p2), %v3948_v39, %v1062_v43  ;;  %vm433_vm2 = vcmask (!%p292_p2), 195712   ;;  %v402_v29 = vld [vmem:[%s4358_s7] sm:$0xff] (!%p292_p2)  ;;  %v403_v30 = vld [vmem:[%s4358_s7 + $0x8] sm:$0xff] (!%p292_p2) }
   0xf   : > { %s4362_s13 = smov (!%p330_p3, %s3203_s13), 7  ;;  %v1070_v48 = vsub.f32 %v3951_v40, %v1069_v44  ;;  %3554 = vmatpush3.bf16.msra.mxu0 %v3966_v56  ;;  %vm440_vm3 = vcmask 261312   ;;  %vm461_vm4 = vcmask 1041409   ;;  %vm463_vm5 = vcmask 261120  }
  0x10   : > { %s3218_s8 = sshll.u32 %s4362_s13, 6  ;;  %v1050_v41 = vand.u32 4294901760, %v1049_v37  ;;  %v1057_v42 = vand.u32 4294901760, %v1056_v38  ;;  %v1064_v49 = vand.u32 4294901760, %v1063_v47  ;;  %3555 = vmatprep.subr.bf16.mxu0 %v3812_v46  ;;  %vm1456_vm6 = vcmask 1041408   ;;  %s4234_s13 = smov 0  }
  0x11   : > { %s3882_s16 = scalar_lea.vmem %s4351_s0, %s3218_s8  ;;  %s3887_s19 = scalar_lea.vmem %s4360_s9, %s3218_s8  ;;  %v1071_v50 = vand.u32 4294901760, %v1070_v48  ;;  %vm1452_vm7 = vcmask 15360   ;;  %vm2478_vm8 = vcmask 0   ;;  %vm2444_vm9 = vcmask 7168  }
  0x12   : > { %v351_v1 = vld [vmem:[%s3882_s16 + $0x40] sm:$0xff]  ;;  %v352_v2 = vld [vmem:[%s3882_s16 + $0x48] sm:$0xff]  ;;  %v353_v6 = vld [vmem:[%s3882_s16 + $0x50] sm:$0xff]  ;;  %v3595_v45 = vpack.c.bf16 %v1057_v42, %v1050_v41 }
  0x13   : > { %v343_v3 = vld [vmem:[%s3882_s16] sm:$0xff]  ;;  %v371_v4 = vadd.f32 %v352_v2, %v351_v1  ;;  %v344_v5 = vld [vmem:[%s3882_s16 + $0x8] sm:$0xff]  ;;  %v354_v7 = vld [vmem:[%s3882_s16 + $0x58] sm:$0xff]  ;;  %v3598_v53 = vpack.c.bf16 %v1071_v50, %v1064_v49  ;;  %v548_v1 = vand.u32 4294901760, %v3968_v57  ;;  %v555_v2 = vand.u32 4294901760, %v3972_v59 }
  0x14   : > { %v359_v8 = vadd.f32 %v344_v5, %v343_v3  ;;  %v345_v9 = vld [vmem:[%s3882_s16 + $0x10] sm:$0xff]  ;;  %v346_v10 = vld [vmem:[%s3882_s16 + $0x18] sm:$0xff]  ;;  %v374_v11 = vadd.f32 %v354_v7, %v353_v6  ;;  %v355_v13 = vld [vmem:[%s3882_s16 + $0x60] sm:$0xff]  ;;  %3596 = vmatpush3.bf16.msra.mxu1 %v3595_v45  ;;  %v3989_v3 = vpack.c.bf16 %v476_v0, %v473_v63  ;;  %v3993_v5 = vsub.f32 %v394_v62, %v476_v0 }
  0x15   : > { %372 = vadd.xlane.f32.xlu1 %v371_v4  ;;  %v362_v12 = vadd.f32 %v346_v10, %v345_v9  ;;  %v356_v14 = vld [vmem:[%s3882_s16 + $0x68] sm:$0xff]  ;;  %v347_v15 = vld [vmem:[%s3882_s16 + $0x20] sm:$0xff]  ;;  %v357_v19 = vld [vmem:[%s3882_s16 + $0x70] sm:$0xff]  ;;  %3597 = vmatprep.subr.bf16.mxu1 %v3812_v46  ;;  %v3991_v4 = vsub.f32 %v393_v61, %v473_v63  ;;  %v3604_v6 = vpack.c.bf16 %v3951_v40, %v3948_v39  ;;  %v1922_v39 = vand.u32 4294901760, %v402_v29 }
  0x16   : > { %360 = vadd.xlane.f32.xlu0 %v359_v8  ;;  %v348_v16 = vld [vmem:[%s3882_s16 + $0x28] sm:$0xff]  ;;  %v377_v17 = vadd.f32 %v356_v14, %v355_v13  ;;  %v358_v20 = vld [vmem:[%s3882_s16 + $0x78] sm:$0xff]  ;;  %v349_v21 = vld [vmem:[%s3882_s16 + $0x30] sm:$0xff]  ;;  %v549_v7 = vsub.f32 %v3968_v57, %v548_v1  ;;  %v556_v8 = vsub.f32 %v3972_v59, %v555_v2  ;;  %3557 = vmatpush3.bf16.msra.mxu0 %v3989_v3  ;;  %v1925_v40 = vand.u32 4294901760, %v403_v30 }
  0x17   : > { %v365_v18 = vadd.f32 %v348_v16, %v347_v15  ;;  %v350_v22 = vld [vmem:[%s3882_s16 + $0x38] sm:$0xff]  ;;  %v380_v23 = vadd.f32 %v358_v20, %v357_v19  ;;  %3558 = vmatprep.subr.bf16.mxu0 %v3812_v46  ;;  %v4011_v16 = vpack.c.bf16 %v970_v28, %v967_v27  ;;  %v4015_v20 = vpack.c.bf16 %v976_v36, %v973_v35 }
  0x18   : > { %v368_v24 = vadd.f32 %v350_v22, %v349_v21  ;;  %3599 = vmatpush3.bf16.msra.mxu1 %v3598_v53  ;;  %v550_v9 = vand.u32 4294901760, %v549_v7  ;;  %v557_v10 = vand.u32 4294901760, %v556_v8  ;;  %v3565_v21 = vpack.c.bf16 %v3972_v59, %v3968_v57 }
  0x19   : > { %375 = vadd.xlane.f32.xlu1 %v374_v11  ;;  %3600 = vmatprep.subr.bf16.mxu1 %v3812_v46  ;;  %v562_v11 = vand.u32 4294901760, %v3991_v4  ;;  %v4023_v22 = vpack.c.bf16 %v1055_v34, %v1048_v33  ;;  %v4029_v25 = vpack.c.bf16 %v555_v2, %v548_v1  ;;  %v415_v27 = vlaneseq }
  0x1a   : > { %363 = vadd.xlane.f32.xlu0 %v362_v12  ;;  %v569_v12 = vand.u32 4294901760, %v3993_v5  ;;  %v4003_v13 = vpack.c.bf16 %v557_v10, %v550_v9  ;;  %v4120_v57 = vsub.f32 %v402_v29, %v1922_v39  ;;  %v4122_v59 = vsub.f32 %v403_v30, %v1925_v40 }
  0x1b   : > { %v563_v14 = vsub.f32 %v3991_v4, %v562_v11  ;;  %v416_v31 = vand.u32 127, %v415_v27  ;;  %v4033_v38 = vshrl.u32 %v415_v27, 7 }
  0x1c   : > { %v570_v15 = vsub.f32 %v3993_v5, %v569_v12  ;;  %v4031_v26 = vpack.c.bf16 %v569_v12, %v562_v11 }
  0x1d   : > { %378 = vadd.xlane.f32.xlu1 %v377_v17  ;;  %v564_v17 = vand.u32 4294901760, %v563_v14  ;;  %v421_v35 = vadd.s32 4294967288, %v416_v31  ;;  %v428_v37 = vadd.s32 4294967280, %v416_v31  ;;  %v435_v42 = vadd.s32 4294967272, %v416_v31 }
  0x1e   : > { %366 = vadd.xlane.f32.xlu0 %v365_v18  ;;  %v571_v18 = vand.u32 4294901760, %v570_v15  ;;  %v419_v47 = vsub.s32 %v416_v31, %v4033_v38 }
  0x1f   : > { %v424_v34 = vsub.s32 %v421_v35, %v4033_v38  ;;  %v438_v54 = vsub.s32 %v435_v42, %v4033_v38 }
  0x20   : > { %v4013_v19 = vpack.c.bf16 %v571_v18, %v564_v17 }
  0x21   : > { %381 = vadd.xlane.f32.xlu1 %v380_v23  ;;  %v3568_v23 = vpack.c.bf16 %v3993_v5, %v3991_v4 }
  0x22   : > { %369 = vadd.xlane.f32.xlu0 %v368_v24  ;;  %v4027_v24 = vpack.c.bf16 %v1069_v44, %v1062_v43  ;;  %v431_v44 = vsub.s32 %v428_v37, %v4033_v38 }
  0xa2   : > { %v373_v28 = vpop.xlane.xlu1 %372 }
  0xa3   : > { %v361_v32 = vpop.xlane.xlu0 %360  ;;  %v387_v48 = vmul.f32 0.00390625, %v373_v28 }
  0xa4   : > { %v383_v51 = vmul.f32 0.00390625, %v361_v32 }
  0xa5   : > { %v445_v63 = vrot.slane %v387_v48, %v419_v47 }
  0xa6   : > { %v376_v36 = vpop.xlane.xlu1 %375  ;;  %v420_v7 = vrot.slane %v383_v51, %v419_v47 }
  0xa7   : > { %v364_v33 = vpop.xlane.xlu0 %363  ;;  %v388_v41 = vmul.f32 0.00390625, %v376_v36 }
  0xa8   : > { %v384_v43 = vmul.f32 0.00390625, %v364_v33  ;;  %v401_v33 = vld [vmem:[%s4356_s5] sm:$0x3] }
  0xa9   : > { %v449_v53 = vrot.slane %v388_v41, %v424_v34  ;;  %v1458_v42 = vsel %vm1456_vm6, %v401_v33, 0  ;;  %v2427_v33 = vsub.s32 1, %v4033_v38 }
  0xaa   : > { %v379_v45 = vpop.xlane.xlu1 %378  ;;  %v425_v55 = vrot.slane %v384_v43, %v424_v34 }
  0xab   : > { %v389_v49 = vmul.f32 0.00390625, %v379_v45  ;;  %v367_v50 = vpop.xlane.xlu0 %366  ;;  %v450_v9 = vsel %vm426_vm1, %v449_v53, %v445_v63 }
  0xac   : > { %v385_v52 = vmul.f32 0.00390625, %v367_v50  ;;  %v427_v11 = vsel %vm426_vm1, %v425_v55, %v420_v7  ;;  %v3209_v55 = vld [vmem:[%s4353_s2] ss:$0 sm:$0xff] }
  0xad   : > { %v454_v61 = vrot.slane %v389_v49, %v431_v44  ;;  %v3637_v49 = vpack.c.bf16 %v4122_v59, %v4120_v57 }
  0xae   : > { %v382_v62 = vpop.xlane.xlu1 %381  ;;  %v432_v0 = vrot.slane %v385_v52, %v431_v44  ;;  %v4151_v44 = vand.u32 4294901760, %v1458_v42 }
  0xaf   : > { %v390_v1 = vmul.f32 0.00390625, %v382_v62  ;;  %v370_v2 = vpop.xlane.xlu0 %369  ;;  %v455_v12 = vsel %vm433_vm2, %v454_v61, %v450_v9  ;;  %v3210_v61 = vld [vmem:[%s4354_s3] ss:$0 sm:$0xff] }
  0xb0   : > { %v386_v8 = vmul.f32 0.00390625, %v370_v2  ;;  %v434_v15 = vsel %vm433_vm2, %v432_v0, %v427_v11 }
  0xb1   : > { %v459_v10 = vrot.slane %v390_v1, %v438_v54 }
  0xb2   : > { %v439_v14 = vrot.slane %v386_v8, %v438_v54 }
  0xb3   : > { %v460_v17 = vsel %vm440_vm3, %v459_v10, %v455_v12  ;;  %v1538_v12 = vsub.f32 %v1458_v42, %v4151_v44 }
  0xb4   : > { %v441_v18 = vsel %vm440_vm3, %v439_v14, %v434_v15 }
  0xb5   : > { %v462_v27 = vsel %vm461_vm4, %v460_v17, %v441_v18 }
  0xb6   : > { %v464_v28 = vsel %vm463_vm5, %v462_v27, 0  ;;  %v1539_v27 = vand.u32 4294901760, %v1538_v12 }
  0xb7   : > { %v535_v31 = vand.u32 4294901760, %v464_v28 }
  0xb9   : > { %v536_v32 = vsub.f32 %v464_v28, %v535_v31  ;;  %3410 = vmatmul.mubr.f32.vlgmr.msra.gmra.mrb[0].mxu1 %v535_v31 }
  0xba   : > { %3602 = vmatpush3.bf16.msra.mxu1 %v3601_v60  ;;  %3420 = vmatprep.mubr.msk.f32.mxu1 %vm3813_vm0, %v3814_v58  ;;  %v404_v60 = vld [vmem:[%s4358_s7 + $0x10] sm:$0xff] }
  0xbb   : > { %3603 = vmatprep.subr.bf16.mxu1 %v3812_v46  ;;  %v537_v35 = vand.u32 4294901760, %v536_v32  ;;  %v1928_v4 = vand.u32 4294901760, %v404_v60 }
  0xbd   : > { %v538_v36 = vsub.f32 %v536_v32, %v537_v35 }
  0xbe   : > { %3605 = vmatpush3.bf16.msra.mxu1 %v3604_v6  ;;  %v2003_v6 = vand.u32 4294901760, %v4120_v57 }
  0xbf   : > { %v539_v37 = vand.u32 4294901760, %v538_v36  ;;  %3606 = vmatprep.subr.bf16.mxu1 %v3812_v46  ;;  %v1540_v36 = vsub.f32 %v1538_v12, %v1539_v27 }
  0xc1   : > { %3333 = vmatmul.mubr.f32.vlgmr.msra.gmra.mrb[0].mxu0 %v539_v37  ;;  %3421 = vmatmul.mubr.f32.vlgmr.msra.gmra.mrb[0].mxu1 %v536_v32  ;;  %v1541_v30 = vand.u32 4294901760, %v1540_v36 }
  0xc2   : > { %3560 = vmatpush3.bf16.msra.mxu0 %v4003_v13  ;;  %3608 = vmatpush3.bf16.msra.mxu1 %v4011_v16  ;;  %v2010_v13 = vand.u32 4294901760, %v4122_v59 }
  0xc3   : > { %3561 = vmatprep.subr.bf16.mxu0 %v3812_v46  ;;  %3609 = vmatprep.subr.bf16.mxu1 %v3812_v46 }
  0xc4   : > { %3343 = vmatprep.mubr.msk.f32.mxu0 %vm3813_vm0, %v3814_v58  ;;  %3431 = vmatprep.mubr.msk.f32.mxu1 %vm3813_vm0, %v3814_v58  ;;  %v3649_v51 = vpack.c.bf16 %v2010_v13, %v2003_v6 }
  0xc6   : > { %3563 = vmatpush3.bf16.msra.mxu0 %v4013_v19  ;;  %3611 = vmatpush3.bf16.msra.mxu1 %v4015_v20  ;;  %v4136_v19 = vsub.f32 %v404_v60, %v1928_v4 }
  0xc7   : > { %3564 = vmatprep.subr.bf16.mxu0 %v3812_v46  ;;  %3612 = vmatprep.subr.bf16.mxu1 %v3812_v46 }
  0xc9   : > { %3344 = vmatmul.mubr.f32.vlgmr.msra.gmra.mrb[0].mxu0 %v535_v31  ;;  %3432 = vmatmul.mubr.f32.vlgmr.msra.gmra.mrb[0].mxu1 %v537_v35 }
  0xca   : > { %3566 = vmatpush3.bf16.msra.mxu0 %v3565_v21  ;;  %3614 = vmatpush3.bf16.msra.mxu1 %v4023_v22  ;;  %v2004_v21 = vsub.f32 %v4120_v57, %v2003_v6  ;;  %v2011_v22 = vsub.f32 %v4122_v59, %v2010_v13 }
  0xcb   : > { %3567 = vmatprep.subr.bf16.mxu0 %v3812_v46  ;;  %3615 = vmatprep.subr.bf16.mxu1 %v3812_v46 }
  0xcc   : > { %3354 = vmatprep.mubr.msk.f32.mxu0 %vm3813_vm0, %v3814_v58  ;;  %3442 = vmatprep.mubr.msk.f32.mxu1 %vm3813_vm0, %v3814_v58 }
  0xce   : > { %3569 = vmatpush3.bf16.msra.mxu0 %v3568_v23  ;;  %3617 = vmatpush3.bf16.msra.mxu1 %v4027_v24  ;;  %v2005_v23 = vand.u32 4294901760, %v2004_v21  ;;  %v2017_v24 = vand.u32 4294901760, %v4136_v19 }
  0xcf   : > { %3570 = vmatprep.subr.bf16.mxu0 %v3812_v46  ;;  %3618 = vmatprep.subr.bf16.mxu1 %v3812_v46 }
  0xd0   : > { %v2018_v34 = vsub.f32 %v4136_v19, %v2017_v24 }
  0xd1   : > { %3355 = vmatmul.mubr.f32.vlgmr.msra.gmra.mrb[0].mxu0 %v536_v32  ;;  %3443 = vmatmul.mubr.f32.vlgmr.msra.gmra.mrb[0].mxu1 %v535_v31 }
  0xd2   : > { %3572 = vmatpush3.bf16.msra.mxu0 %v3966_v56  ;;  %3620 = vmatpush3.bf16.msra.mxu1 %v4011_v16  ;;  %v2019_v45 = vand.u32 4294901760, %v2018_v34 }
  0xd3   : > { %3573 = vmatprep.subr.bf16.mxu0 %v3812_v46  ;;  %3621 = vmatprep.subr.bf16.mxu1 %v3812_v46 }
  0xd4   : > { %3365 = vmatprep.mubr.msk.f32.mxu0 %vm3813_vm0, %v3814_v58  ;;  %3453 = vmatprep.mubr.msk.f32.mxu1 %vm3813_vm0, %v3814_v58 }
  0xd6   : > { %3575 = vmatpush3.bf16.msra.mxu0 %v3989_v3  ;;  %3623 = vmatpush3.bf16.msra.mxu1 %v4015_v20 }
  0xd7   : > { %3576 = vmatprep.subr.bf16.mxu0 %v3812_v46  ;;  %3624 = vmatprep.subr.bf16.mxu1 %v3812_v46 }
  0xd9   : > { %3366 = vmatmul.mubr.f32.vlgmr.msra.gmra.mrb[0].mxu0 %v537_v35  ;;  %3454 = vmatmul.mubr.f32.vlgmr.msra.gmra.mrb[0].mxu1 %v535_v31 }
  0xda   : > { %3578 = vmatpush3.bf16.msra.mxu0 %v4029_v25  ;;  %3376 = vmatprep.mubr.msk.f32.mxu0 %vm3813_vm0, %v3814_v58 }
  0xdb   : > { %3579 = vmatprep.subr.bf16.mxu0 %v3812_v46  ;;  %3494 = vmatprep.mubr.msk.f32.mxu1 %vm3813_vm0, %v3814_v58 }
  0xde   : > { %3581 = vmatpush3.bf16.msra.mxu0 %v4031_v26  ;;  %v2012_v26 = vand.u32 4294901760, %v2011_v22 }
  0xdf   : > { %3582 = vmatprep.subr.bf16.mxu0 %v3812_v46 }
  0xe0   : > { %v3631_v43 = vpack.c.bf16 %v2012_v26, %v2005_v23 }
  0xe1   : > { %3377 = vmatmul.mubr.f32.vlgmr.msra.gmra.mrb[0].mxu0 %v535_v31 }
  0xe2   : > { %3584 = vmatpush3.bf16.msra.mxu0 %v3966_v56  ;;  %3387 = vmatprep.mubr.msk.f32.mxu0 %vm3813_vm0, %v3814_v58  ;;  %v4118_v56 = vpack.c.bf16 %v1925_v40, %v1922_v39  ;;  %v3815_v40 = vmov 1966171168  }
  0xe3   : > { %3585 = vmatprep.subr.bf16.mxu0 %v3812_v46  ;;  %v2455_v57 = vunpack.c.l.s4 %v3815_v40 }
  0xe4   : > { %3626 = vmatpush3.bf16.msra.mxu1 %v4118_v56 }
  0xe5   : > { %3627 = vmatprep.subr.bf16.mxu1 %v3812_v46  ;;  %v2456_v59 = vunpack.c.0.s8 %v2455_v57 }
  0xe6   : > { %3587 = vmatpush3.bf16.msra.mxu0 %v3989_v3  ;;  %v405_v3 = vld [vmem:[%s4358_s7 + $0x18] sm:$0xff] }
  0xe7   : > { %3588 = vmatprep.subr.bf16.mxu0 %v3812_v46  ;;  %v1931_v5 = vand.u32 4294901760, %v405_v3  ;;  %v2459_v60 = vsub.s32 %v2456_v59, %v4033_v38 }
  0xe9   : > { %3388 = vmatmul.mubr.f32.vlgmr.msra.gmra.mrb[0].mxu0 %v535_v31 }
  0xea   : > { %3590 = vmatpush3.bf16.msra.mxu0 %v4011_v16  ;;  %3398 = vmatprep.mubr.msk.f32.mxu0 %vm3813_vm0, %v3814_v58  ;;  %v4134_v16 = vpack.c.bf16 %v1931_v5, %v1928_v4 }
  0xeb   : > { %3591 = vmatprep.subr.bf16.mxu0 %v3812_v46 }
  0xec   : > { %3629 = vmatpush3.bf16.msra.mxu1 %v4134_v16 }
  0xed   : > { %3630 = vmatprep.subr.bf16.mxu1 %v3812_v46 }
  0xee   : > { %3593 = vmatpush3.bf16.msra.mxu0 %v4015_v20  ;;  %v4138_v20 = vsub.f32 %v405_v3, %v1931_v5 }
  0xef   : > { %3456 = vmatprep.subr.mxu0 %v3814_v58 }
  0xf0   : > { %v2024_v25 = vand.u32 4294901760, %v4138_v20  ;;  %v3640_v50 = vpack.c.bf16 %v4138_v20, %v4136_v19 }
  0xf1   : > { %3399 = vmatmul.mubr.f32.vlgmr.msra.gmra.mrb[2].mxu0 %v539_v37 }
  0xf2   : > { %3458 = vmatprep.mubr.msk.f32.mxu0 %vm3813_vm0, %v3814_v58  ;;  %v2025_v41 = vsub.f32 %v4138_v20, %v2024_v25  ;;  %3457 = vmatpush3.msra.mxu0 %v4151_v44  ;;  %v4159_v52 = vpack.c.bf16 %v2024_v25, %v2017_v24  ;;  %v4217_v24 = vsub.s32 0, %v4033_v38 }
  0xf3   : > { %3461 = vmatprep.subr.mxu0 %v3814_v58 }
  0xf4   : > { %v2026_v47 = vand.u32 4294901760, %v2025_v41  ;;  %v4224_v41 = vld [vmem:[%s4357_s6] sm:$0x1] }
  0xf6   : > { %v3634_v48 = vpack.c.bf16 %v2026_v47, %v2019_v45 }
 0x1ac   : > { %v1447_v53 = vpop.f32.mrb[0].mxu1 }
 0x1ad   : > { %v3455_v54 = vpop.f32.mrb[1].mxu1 }
 0x1bc   : > { %v947_v62 = vpop.f32.mrb[0].mxu0 }
 0x1bd   : > { %v957_v63 = vmul.f32 %v3209_v55, %v947_v62  ;;  %v3389_v0 = vpop.f32.mrb[1].mxu0 }
 0x1bf   : > { %v964_v1 = vadd.f32 %v3210_v61, %v957_v63 }
 0x1c1   : > { %v965_v2 = vmax.f32 %v964_v1, 0.0 }
 0x1c3   : > { %v1919_v7 = vsel %vm463_vm5, %v965_v2, 0 }
 0x1c4   : > { %v4168_v8 = vand.u32 4294901760, %v1919_v7  ;;  %v1041_v9 = vpop.f32.mrb[2].mxu0 }
 0x1c5   : > { %v3708_v10 = vadd.f32 %v1447_v53, %v1041_v9  ;;  %v3400_v11 = vpop.f32.mrb[3].mxu0 }
 0x1c6   : > { %v1991_v14 = vsub.f32 %v1919_v7, %v4168_v8 }
 0x1c7   : > { %v1451_v15 = vmax.f32 %v3708_v10, 0.0 }
 0x1c8   : > { %v1992_v17 = vand.u32 4294901760, %v1991_v14 }
 0x1c9   : > { %v1454_v18 = vsel %vm1452_vm7, %v1451_v15, 0 }
 0x1ca   : > { %v1526_v28 = vand.u32 4294901760, %v1454_v18  ;;  %v1993_v31 = vsub.f32 %v1991_v14, %v1992_v17 }
 0x1cc   : > { %v1527_v32 = vsub.f32 %v1454_v18, %v1526_v28  ;;  %v1994_v35 = vand.u32 4294901760, %v1993_v31 }
 0x1ce   : > { %v1528_v37 = vand.u32 4294901760, %v1527_v32  ;;  %3495 = vmatmul.mubr.f32.vlgmr.msra.gmra.mrb[2].mxu1 %v1994_v35 }
 0x1cf   : > { %3632 = vmatpush3.bf16.msra.mxu1 %v3631_v43  ;;  %3505 = vmatprep.mubr.msk.f32.mxu1 %vm3813_vm0, %v3814_v58 }
 0x1d0   : > { %3633 = vmatprep.subr.bf16.mxu1 %v3812_v46  ;;  %v1529_v29 = vsub.f32 %v1527_v32, %v1528_v37 }
 0x1d2   : > { %v1530_v39 = vand.u32 4294901760, %v1529_v29 }
 0x1d3   : > { %3635 = vmatpush3.bf16.msra.mxu1 %v3634_v48 }
 0x1d4   : > { %3459 = vmatmul.mubr.f32.vlgmr.msra.gmra.mrb[4].mxu0 %v1530_v39  ;;  %3636 = vmatprep.subr.bf16.mxu1 %v3812_v46 }
 0x1d5   : > { %3462 = vmatpush3.msra.mxu0 %v1541_v30  ;;  %3463 = vmatprep.mubr.msk.f32.mxu0 %vm3813_vm0, %v3814_v58 }
 0x1d6   : > { %3506 = vmatmul.mubr.f32.vlgmr.msra.gmra.mrb[2].mxu1 %v4168_v8  ;;  %3466 = vmatprep.subr.mxu0 %v3814_v58 }
 0x1d7   : > { %3638 = vmatpush3.bf16.msra.mxu1 %v3637_v49  ;;  %3516 = vmatprep.mubr.msk.f32.mxu1 %vm3813_vm0, %v3814_v58 }
 0x1d8   : > { %3639 = vmatprep.subr.bf16.mxu1 %v3812_v46 }
 0x1db   : > { %3641 = vmatpush3.bf16.msra.mxu1 %v3640_v50 }
 0x1dc   : > { %3464 = vmatmul.mubr.f32.vlgmr.msra.gmra.mrb[4].mxu0 %v1526_v28  ;;  %3642 = vmatprep.subr.bf16.mxu1 %v3812_v46 }
 0x1dd   : > { %3467 = vmatpush3.msra.mxu0 %v1538_v12  ;;  %3468 = vmatprep.mubr.msk.f32.mxu0 %vm3813_vm0, %v3814_v58 }
 0x1de   : > { %3517 = vmatmul.mubr.f32.vlgmr.msra.gmra.mrb[2].mxu1 %v1991_v14  ;;  %3471 = vmatprep.subr.mxu0 %v3814_v58 }
 0x1df   : > { %3644 = vmatpush3.bf16.msra.mxu1 %v4118_v56  ;;  %3527 = vmatprep.mubr.msk.f32.mxu1 %vm3813_vm0, %v3814_v58 }
 0x1e0   : > { %3645 = vmatprep.subr.bf16.mxu1 %v3812_v46 }
 0x1e3   : > { %3647 = vmatpush3.bf16.msra.mxu1 %v4134_v16 }
 0x1e4   : > { %3469 = vmatmul.mubr.f32.vlgmr.msra.gmra.mrb[4].mxu0 %v1527_v32  ;;  %3648 = vmatprep.subr.bf16.mxu1 %v3812_v46 }
 0x1e5   : > { %3472 = vmatpush3.msra.mxu0 %v4151_v44  ;;  %3473 = vmatprep.mubr.msk.f32.mxu0 %vm3813_vm0, %v3814_v58 }
 0x1e6   : > { %3528 = vmatmul.mubr.f32.vlgmr.msra.gmra.mrb[2].mxu1 %v1992_v17  ;;  %3476 = vmatprep.subr.mxu0 %v3814_v58 }
 0x1e7   : > { %3650 = vmatpush3.bf16.msra.mxu1 %v3649_v51  ;;  %3538 = vmatprep.mubr.msk.f32.mxu1 %vm3813_vm0, %v3814_v58 }
 0x1e8   : > { %3651 = vmatprep.subr.bf16.mxu1 %v3812_v46 }
 0x1eb   : > { %3653 = vmatpush3.bf16.msra.mxu1 %v4159_v52 }
 0x1ec   : > { %3474 = vmatmul.mubr.f32.vlgmr.msra.gmra.mrb[4].mxu0 %v1528_v37  ;;  %3654 = vmatprep.subr.bf16.mxu1 %v3812_v46 }
 0x1ed   : > { %3477 = vmatpush3.msra.mxu0 %v1539_v27  ;;  %3478 = vmatprep.mubr.msk.f32.mxu0 %vm3813_vm0, %v3814_v58 }
 0x1ee   : > { %3539 = vmatmul.mubr.f32.vlgmr.msra.gmra.mrb[2].mxu1 %v4168_v8  ;;  %3481 = vmatprep.subr.mxu0 %v3814_v58 }
 0x1ef   : > { %3656 = vmatpush3.bf16.msra.mxu1 %v4118_v56  ;;  %3549 = vmatprep.mubr.msk.f32.mxu1 %vm3813_vm0, %v3814_v58  ;;  %v3211_v56 = vld [vmem:[#allocation4] ss:$0 sm:$0xff] }
 0x1f0   : > { %3657 = vmatprep.subr.bf16.mxu1 %v3812_v46 }
 0x1f3   : > { %3659 = vmatpush3.bf16.msra.mxu1 %v4134_v16 }
 0x1f4   : > { %3479 = vmatmul.mubr.f32.vlgmr.msra.gmra.mrb[4].mxu0 %v1526_v28 }
 0x1f5   : > { %3482 = vmatpush3.msra.mxu0 %v4151_v44  ;;  %3483 = vmatprep.mubr.msk.f32.mxu0 %vm3813_vm0, %v3814_v58 }
 0x1f6   : > { %3550 = vmatmul.mubr.f32.vlgmr.msra.gmra.mrb[2].mxu1 %v4168_v8 }
 0x1fc   : > { %3484 = vmatmul.mubr.f32.vlgmr.msra.gmra.mrb[4].mxu0 %v1526_v28 }
 0x2c9   : > { %v2402_v3 = vpop.f32.mrb[2].mxu1 }
 0x2ca   : > { %v3709_v4 = vadd.f32 %v3211_v56, %v2402_v3  ;;  %v3551_v46 = vpop.f32.mrb[3].mxu1 }
 0x2cc   : > { %v2460_v5 = vrot.slane %v3709_v4, %v2459_v60 }
 0x2ce   : > { %v2461_v6 = vcombine.high %v2460_v5, %v2460_v5  ;;  %v2468_v13 = vrot.slane %v2460_v5, %v2459_v60 }
 0x2cf   : > { %v1902_v16 = vpop.f32.mrb[4].mxu0 }
 0x2d0   : > { %v2475_v19 = vrot.slane %v2461_v6, %v2459_v60  ;;  %2479 = vst.msk [vmem:[#allocation3] sm:$0x1] %vm2478_vm8, %v2468_v13  ;;  %v1906_v58 = vsub.f32 0.0, %v1902_v16  ;;  %v3485_v20 = vpop.f32.mrb[5].mxu0 }
 0x2d2   : > { %2480 = vst.msk [vmem:[#allocation3 + $0x1] sm:$0x1] %vm2478_vm8, %v2475_v19  ;;  %v1907_v21 = vmul.f32 1.442695, %v1906_v58 }
 0x2d4   : > { %3782 = vpow2.f32 %v1907_v21 }
 0x2de   : > { %v3783_v22 = vpop.eup %3782 }
 0x2df   : > { %v1909_v23 = vadd.f32 1.0, %v3783_v22 }
 0x2e1   : > { %3784 = vrcp.f32 %v1909_v23 }
 0x2eb   : > { %v3785_v25 = vpop.eup %3784 }
 0x2ec   : > { %v2409_v26 = vrot.slane %v3785_v25, %v4217_v24  ;;  %v2428_v34 = vrot.slane %v3785_v25, %v2427_v33 }
 0x2ee   : > { %2415 = vbcast.lane.b32.xlu1 %v2409_v26, 264  ;;  %2411 = vbcast.lane.b32.xlu0 %v2409_v26, 256 }
 0x2f2   : > { %2419 = vbcast.lane.b32.xlu1 %v2409_v26, 272  ;;  %2430 = vbcast.lane.b32.xlu0 %v2428_v34, 256 }
 0x2f6   : > { %2423 = vbcast.lane.b32.xlu1 %v2409_v26, 280  ;;  %2438 = vbcast.lane.b32.xlu0 %v2428_v34, 272 }
 0x2fa   : > { %2434 = vbcast.lane.b32.xlu1 %v2428_v34, 264 }
 0x2fe   : > { %2442 = vbcast.lane.b32.xlu1 %v2428_v34, 280 }
 0x360   : > { %v2416_v42 = vpop.permute.xlu1 %2415  ;;  %v2412_v43 = vpop.permute.xlu0 %2411 }
 0x361   : > { %2446 = vst.msk [vmem:[#allocation2 + $0x8] sm:$0xff] %vm2444_vm9, %v2416_v42  ;;  %2445 = vst.msk [vmem:[#allocation2] sm:$0xff] %vm2444_vm9, %v2412_v43 }
 0x364   : > { %v2420_v38 = vpop.permute.xlu1 %2419  ;;  %v2431_v44 = vpop.permute.xlu0 %2430 }
 0x365   : > { %2447 = vst.msk [vmem:[#allocation2 + $0x10] sm:$0xff] %vm2444_vm9, %v2420_v38  ;;  %2449 = vst.msk [vmem:[#allocation2 + $0x20] sm:$0xff] %vm2444_vm9, %v2431_v44 }
 0x368   : > { %v2424_v45 = vpop.permute.xlu1 %2423  ;;  %v2439_v47 = vpop.permute.xlu0 %2438 }
 0x369   : > { %2448 = vst.msk [vmem:[#allocation2 + $0x18] sm:$0xff] %vm2444_vm9, %v2424_v45  ;;  %2451 = vst.msk [vmem:[#allocation2 + $0x30] sm:$0xff] %vm2444_vm9, %v2439_v47 }
 0x36c   : > { %v2435_v48 = vpop.permute.xlu1 %2434 }
 0x36d   : > { %2450 = vst.msk [vmem:[#allocation2 + $0x28] sm:$0xff] %vm2444_vm9, %v2435_v48 }
 0x370   : > { %v2443_v49 = vpop.permute.xlu1 %2442 }
 0x371   : > { %2452 = vst.msk [vmem:[#allocation2 + $0x38] sm:$0xff] %vm2444_vm9, %v2443_v49 }
 0x372 LB: >> { %v3816_v50 = vmov 0   ;;  %s3214_s8 = sshll.u32 %s3810_s13, 5  ;;  %s2533_s15 = scalar_lea.vmem [#allocation3], %s3810_s13  ;;  %v3817_v61 = vmov 0.0   ;;  %v2545_v62 = vsel %vm463_vm5, %v4224_v41, 0  ;;  %s3810_s13 = sphi %s4234_s13, %s2487_s13  }
 0x373   : >> { %3787 = vset.pattern.permute.xlu1 %v3816_v50  ;;  %3786 = vset.pattern.permute.xlu0 %v3816_v50  ;;  %s2500_s14 = scalar_lea.vmem [#allocation2], %s3214_s8  ;;  %v2534_v55 = vld [vmem:[%s2533_s15] sm:$0x1]  ;;  %s3220_s17 = sshll.u32 %s3810_s13, 6  ;;  %v4249_v7 = vand.u32 4294901760, %v2545_v62 }
 0x374   : >> { %2619 = vmatprep.mubr.f32.mxu1 %v3817_v61  ;;  %2904 = vmatprep.mubr.f32.mxu0 %v3817_v61  ;;  %s2490_s18 = scalar_lea.vmem %s3882_s16, %s3220_s17  ;;  %s3119_s20 = scalar_lea.vmem %s3887_s19, %s3220_s17 }
 0x375   : >> { %v2495_v63 = vld [vmem:[%s2490_s18 + $0x20] sm:$0xff]  ;;  %v2496_v0 = vld [vmem:[%s2490_s18 + $0x28] sm:$0xff]  ;;  %v2497_v15 = vld [vmem:[%s2490_s18 + $0x30] sm:$0xff]  ;;  %v4260_v28 = vsub.f32 %v2545_v62, %v4249_v7  ;;  %s2487_s13 = sadd.s32 1, %s3810_s13  }
 0x376   : >> { %v2491_v1 = vld [vmem:[%s2490_s18] sm:$0xff]  ;;  %v2492_v2 = vld [vmem:[%s2490_s18 + $0x8] sm:$0xff]  ;;  %v2498_v17 = vld [vmem:[%s2490_s18 + $0x38] sm:$0xff]  ;;  %p2484_p4 = scmp.ge.s32.totalorder %s2487_s13, 2  }
 0x377   : >> { %v2493_v18 = vld [vmem:[%s2490_s18 + $0x10] sm:$0xff]  ;;  %v2494_v27 = vld [vmem:[%s2490_s18 + $0x18] sm:$0xff]  ;;  %v2622_v3 = vand.u32 4294901760, %v4260_v28 }
 0x378   : >> { %v2503_v51 = vld [vmem:[%s2500_s14 + $0x10] sm:$0xff]  ;;  %v2501_v52 = vld [vmem:[%s2500_s14] sm:$0xff]  ;;  %v2504_v53 = vld [vmem:[%s2500_s14 + $0x18] sm:$0xff] }
 0x379   : >> { %2517 = vperm.xlu1 %3787, %v2503_v51   ;;  %2507 = vperm.xlu0 %3786, %v2501_v52   ;;  %v2502_v54 = vld [vmem:[%s2500_s14 + $0x8] sm:$0xff]  ;;  %v2623_v42 = vsub.f32 %v4260_v28, %v2622_v3 }
 0x37d   : >> { %2522 = vperm.xlu1 %3787, %v2504_v53   ;;  %2512 = vperm.xlu0 %3786, %v2502_v54  }
 0x381   : >> { %2537 = vperm.xlu0 %3786, %v2534_v55   ;;  %v2624_v55 = vand.u32 4294901760, %v2623_v42 }
 0x3f8   : >> { %v2518_v8 = vpop.permute.xlu1 %2517  ;;  %v2508_v9 = vpop.permute.xlu0 %2507 }
 0x3f9   : >> { %v4251_v10 = vmul.f32 %v2518_v8, %v2495_v63  ;;  %v4253_v11 = vmul.f32 %v2518_v8, %v2496_v0  ;;  %v4255_v12 = vmul.f32 %v2508_v9, %v2491_v1  ;;  %v4257_v14 = vmul.f32 %v2508_v9, %v2492_v2 }
 0x3fb   : >> { %v2547_v31 = vand.u32 4294901760, %v4257_v14  ;;  %v2549_v32 = vand.u32 4294901760, %v4255_v12  ;;  %v2555_v35 = vand.u32 4294901760, %v4253_v11  ;;  %v2557_v29 = vand.u32 4294901760, %v4251_v10 }
 0x3fc   : >> { %v2523_v36 = vpop.permute.xlu1 %2522  ;;  %v2513_v37 = vpop.permute.xlu0 %2512 }
 0x3fd   : >> { %v4266_v30 = vmul.f32 %v2523_v36, %v2497_v15  ;;  %v4268_v39 = vmul.f32 %v2523_v36, %v2498_v17  ;;  %v4270_v40 = vmul.f32 %v2513_v37, %v2493_v18  ;;  %v4272_v57 = vmul.f32 %v2513_v37, %v2494_v27 }
 0x3fe   : >> { %v4275_v59 = vsub.f32 %v4257_v14, %v2547_v31  ;;  %v4278_v56 = vsub.f32 %v4255_v12, %v2549_v32  ;;  %v4281_v60 = vsub.f32 %v4253_v11, %v2555_v35  ;;  %v4297_v21 = vsub.f32 %v4251_v10, %v2557_v29 }
 0x3ff   : >> { %v2559_v4 = vand.u32 4294901760, %v4268_v39  ;;  %v2561_v46 = vand.u32 4294901760, %v4266_v30  ;;  %v2551_v5 = vand.u32 4294901760, %v4272_v57  ;;  %v2553_v6 = vand.u32 4294901760, %v4270_v40 }
 0x400   : >> { %v2633_v13 = vand.u32 4294901760, %v4275_v59  ;;  %v2639_v16 = vand.u32 4294901760, %v4278_v56  ;;  %v2657_v26 = vand.u32 4294901760, %v4281_v60  ;;  %v2663_v48 = vand.u32 4294901760, %v4297_v21 }
 0x401   : >> { %v4291_v19 = vsub.f32 %v4268_v39, %v2559_v4  ;;  %v4294_v58 = vsub.f32 %v4266_v30, %v2561_v46  ;;  %v3660_v20 = vpack.c.bf16 %v2551_v5, %v2547_v31  ;;  %v2644_v22 = vsub.f32 %v4272_v57, %v2551_v5 }
 0x402   : >> { %v3662_v23 = vpack.c.bf16 %v2553_v6, %v2549_v32  ;;  %v4301_v25 = vsub.f32 %v4270_v40, %v2553_v6  ;;  %v3664_v34 = vpack.c.bf16 %v2559_v4, %v2555_v35  ;;  %v2634_v43 = vsub.f32 %v4275_v59, %v2633_v13 }
 0x403   : >> { %v2675_v33 = vand.u32 4294901760, %v4294_v58  ;;  %3661 = vmatprep.subr.bf16.mxu1 %v3660_v20  ;;  %3685 = vmatprep.subr.bf16.mxu0 %v3660_v20  ;;  %v2645_v38 = vand.u32 4294901760, %v2644_v22  ;;  %v2640_v44 = vsub.f32 %v4278_v56, %v2639_v16  ;;  %v2669_v47 = vand.u32 4294901760, %v4291_v19 }
 0x404   : >> { %3663 = vmatpush1.bf16.msra.mxu1 %v3662_v23  ;;  %3687 = vmatpush1.bf16.msra.mxu0 %v3662_v23  ;;  %v2651_v45 = vand.u32 4294901760, %v4301_v25  ;;  %v3666_v49 = vpack.c.bf16 %v2561_v46, %v2557_v29  ;;  %v2658_v52 = vsub.f32 %v4281_v60, %v2657_v26  ;;  %v2635_v63 = vand.u32 4294901760, %v2634_v43 }
 0x405   : >> { %3665 = vmatprep.subr.bf16.mxu1 %v3664_v34  ;;  %3689 = vmatprep.subr.bf16.mxu0 %v3664_v34  ;;  %v2646_v50 = vsub.f32 %v2644_v22, %v2645_v38  ;;  %v2676_v53 = vsub.f32 %v4294_v58, %v2675_v33  ;;  %v3692_v54 = vpack.c.bf16 %v2645_v38, %v2633_v13  ;;  %v2641_v1 = vand.u32 4294901760, %v2640_v44 }
 0x406   : >> { %v2652_v51 = vsub.f32 %v4301_v25, %v2651_v45  ;;  %v2670_v62 = vsub.f32 %v4291_v19, %v2669_v47  ;;  %v2664_v9 = vsub.f32 %v4297_v21, %v2663_v48  ;;  %v3694_v18 = vpack.c.bf16 %v2651_v45, %v2639_v16 }
 0x407   : >> { %v2647_v0 = vand.u32 4294901760, %v2646_v50  ;;  %v2659_v27 = vand.u32 4294901760, %v2658_v52  ;;  %v3696_v31 = vpack.c.bf16 %v2669_v47, %v2657_v26  ;;  %v2677_v32 = vand.u32 4294901760, %v2676_v53 }
 0x408   : >> { %3667 = vmatpush1.bf16.msra.mxu1 %v3666_v49  ;;  %3691 = vmatpush1.bf16.msra.mxu0 %v3666_v49  ;;  %v2653_v2 = vand.u32 4294901760, %v2652_v51  ;;  %v2671_v8 = vand.u32 4294901760, %v2670_v62  ;;  %v2665_v36 = vand.u32 4294901760, %v2664_v9  ;;  %v3698_v37 = vpack.c.bf16 %v2675_v33, %v2663_v48 }
 0x409   : >> { %3693 = vmatprep.subr.bf16.mxu0 %v3692_v54  ;;  %v3668_v15 = vpack.c.bf16 %v2647_v0, %v2635_v63  ;;  %v3676_v4 = vpack.c.bf16 %v2644_v22, %v4275_v59  ;;  %v3680_v46 = vpack.c.bf16 %v4291_v19, %v4281_v60  ;;  %v3682_v59 = vpack.c.bf16 %v4294_v58, %v4297_v21 }
 0x40a   : >> { %v3670_v17 = vpack.c.bf16 %v2653_v2, %v2641_v1  ;;  %v3672_v35 = vpack.c.bf16 %v2671_v8, %v2659_v27  ;;  %v3674_v29 = vpack.c.bf16 %v2677_v32, %v2665_v36 }
 0x40b   : >> { %2625 = vmatmul.mubr.f32.vlgmr.msra.gmra.mrb[0].mxu1 %v2624_v55  ;;  %2908 = vmatmul.mubr.f32.vlgmr.msra.gmra.mrb[0].mxu0 %v2622_v3  ;;  %v3678_v3 = vpack.c.bf16 %v4301_v25, %v4278_v56  ;;  %v2538_v56 = vpop.permute.xlu0 %2537 }
 0x40c   : >> { %3669 = vmatprep.subr.bf16.mxu1 %v3668_v15  ;;  %3695 = vmatpush1.bf16.msra.mxu0 %v3694_v18  ;;  %v2543_v5 = vrot.slane %v2538_v56, %v4217_v24 }
 0x40d   : >> { %3671 = vmatpush1.bf16.msra.mxu1 %v3670_v17  ;;  %3697 = vmatprep.subr.bf16.mxu0 %v3696_v31 }
 0x40e   : >> { %3673 = vmatprep.subr.bf16.mxu1 %v3672_v35  ;;  %2735 = vmatprep.mubr.f32.mxu1 %v3817_v61 }
 0x40f   : >> { %3002 = vmatprep.mubr.f32.mxu0 %v3817_v61 }
 0x410   : >> { %3699 = vmatpush1.bf16.msra.mxu0 %v3698_v37 }
 0x411   : >> { %3675 = vmatpush1.bf16.msra.mxu1 %v3674_v29  ;;  %3701 = vmatprep.subr.bf16.mxu0 %v3660_v20 }
 0x412   : >> { %3677 = vmatprep.subr.bf16.mxu1 %v3676_v4 }
 0x413   : >> { %3004 = vmatmul.mubr.f32.vlgmr.msra.gmra.mrb[0].mxu0 %v4249_v7 }
 0x414   : >> { %2737 = vmatmul.mubr.f32.vlgmr.msra.gmra.mrb[0].mxu1 %v4249_v7  ;;  %3703 = vmatpush1.bf16.msra.mxu0 %v3662_v23 }
 0x415   : >> { %3679 = vmatpush1.bf16.msra.mxu1 %v3678_v3  ;;  %3705 = vmatprep.subr.bf16.mxu0 %v3664_v34 }
 0x416   : >> { %3681 = vmatprep.subr.bf16.mxu1 %v3680_v46  ;;  %2823 = vmatprep.mubr.f32.mxu1 %v3817_v61 }
 0x417   : >> { %3082 = vmatprep.mubr.f32.mxu0 %v3817_v61 }
 0x418   : >> { %3707 = vmatpush1.bf16.msra.mxu0 %v3666_v49 }
 0x419   : >> { %3683 = vmatpush1.bf16.msra.mxu1 %v3682_v59 }
 0x41b   : >> { %3084 = vmatmul.mubr.f32.vlgmr.msra.gmra.mrb[0].mxu0 %v4249_v7 }
 0x41c   : >> { %2826 = vmatmul.mubr.f32.vlgmr.msra.gmra.mrb[0].mxu1 %v4260_v28 }
 0x4ee   : >> { %v3085_v60 = vpop.f32.mrb[0].mxu0 }
 0x4ef   : >> { %v2827_v6 = vpop.f32.mrb[0].mxu1  ;;  %v3087_v13 = vpop.f32.mrb[1].mxu0 }
 0x4f0   : >> { %v3748_v16 = vadd.f32 %v2827_v6, %v2543_v5  ;;  %v2829_v19 = vpop.f32.mrb[1].mxu1 }
 0x4f1   : >> { %v3750_v20 = vadd.f32 %v2829_v19, %v2543_v5 }
 0x4f2   : >> { %v3749_v22 = vadd.f32 %v3748_v16, %v3085_v60 }
 0x4f3   : >> { %v3751_v23 = vadd.f32 %v3750_v20, %v3087_v13 }
 0x4f4   : >> { %v3090_v61 = vsub.f32 0.0, %v3749_v22 }
 0x4f5   : >> { %v3091_v58 = vsub.f32 0.0, %v3751_v23 }
 0x4f6   : >> { %v3092_v21 = vmul.f32 1.442695, %v3090_v61 }
 0x4f7   : >> { %v3094_v25 = vmul.f32 1.442695, %v3091_v58 }
 0x4f8   : >> { %3788 = vpow2.f32 %v3092_v21 }
 0x4f9   : >> { %3790 = vpow2.f32 %v3094_v25 }
 0x502   : >> { %v3789_v7 = vpop.eup %3788 }
 0x503   : >> { %v3791_v28 = vpop.eup %3790  ;;  %v3096_v26 = vadd.f32 1.0, %v3789_v7 }
 0x504   : >> { %v3097_v33 = vadd.f32 1.0, %v3791_v28 }
 0x505   : >> { %3792 = vrcp.f32 %v3096_v26 }
 0x506   : >> { %3794 = vrcp.f32 %v3097_v33 }
 0x50f   : >> { %v3793_v34 = vpop.eup %3792 }
 0x510   : >> { %v3795_v42 = vpop.eup %3794  ;;  %v3105_v43 = vrot.slane %v3793_v34, %v4217_v24 }
 0x511   : >> { %v3109_v38 = vrot.slane %v3795_v42, %v4217_v24  ;;  %2486 = sbr.rel (!%p2484_p4) target bundleno = 882 (0x372), region = 97 }
 0x512   : >> { %v3110_v44 = vmul.f32 %v3105_v43, %v4255_v12  ;;  %v3112_v45 = vmul.f32 %v3105_v43, %v4270_v40  ;;  %v3114_v47 = vmul.f32 %v3105_v43, %v4251_v10  ;;  %v3116_v48 = vmul.f32 %v3105_v43, %v4266_v30 }
 0x513   : >> { %v3111_v49 = vmul.f32 %v3109_v38, %v4257_v14  ;;  %v3113_v50 = vmul.f32 %v3109_v38, %v4272_v57  ;;  %v3115_v51 = vmul.f32 %v3109_v38, %v4253_v11  ;;  %v3117_v52 = vmul.f32 %v3109_v38, %v4268_v39 }
 0x514   : >> { %3120 = vst [vmem:[%s3119_s20] sm:$0xff] %v3110_v44  ;;  %3122 = vst [vmem:[%s3119_s20 + $0x10] sm:$0xff] %v3112_v45 }
 0x515   : >> { %3124 = vst [vmem:[%s3119_s20 + $0x20] sm:$0xff] %v3114_v47  ;;  %3126 = vst [vmem:[%s3119_s20 + $0x30] sm:$0xff] %v3116_v48 }
 0x516   : >> { %3121 = vst [vmem:[%s3119_s20 + $0x8] sm:$0xff] %v3111_v49  ;;  %3123 = vst [vmem:[%s3119_s20 + $0x18] sm:$0xff] %v3113_v50 }
 0x517   : >> { %3125 = vst [vmem:[%s3119_s20 + $0x28] sm:$0xff] %v3115_v51  ;;  %3127 = vst [vmem:[%s3119_s20 + $0x38] sm:$0xff] %v3117_v52 }
 0x518 PF: > { %s21_s11 = sadd.s32 1, %s3806_s11  }
 0x519   : > { %p18_p5 = scmp.ge.s32.totalorder %s21_s11, 6  }
 0x51b   :  { %20 = sbr.rel (!%p18_p5) target bundleno = 3 (0x3), region = 108 }

</bundles_post_ra>
